<compile_context>
chip_gen: v7x
topology: tpu7x:2x2x1
jax: 0.10.0
libtpu: 0.0.40
codegen_flags: <defaults>
</compile_context>

<pallas_src>
import functools

import jax
import jax.numpy as jnp
from jax.experimental import pallas as pl
from jax.experimental.pallas import tpu as pltpu

EPS = 1e-5


def _round_up(x, m):
    return ((x + m - 1) // m) * m


def _cdiv(a, b):
    return -(-a // b)


def _vmem_limit_bytes():
    # ~75% of physical VMEM: v7x has only 64 MiB/TC so never claim it all;
    # on v5e/v6e this comfortably raises the small default scoped limit.
    try:
        return int(pltpu.get_tpu_info().vmem_capacity_bytes * 3 // 4)
    except Exception:  # pragma: no cover - conservative fallback
        return 48 * 1024 * 1024


def _conv_stats_kernel(x_ref, w_ref, y_ref, stats_ref, acc_ref, *, m, tm):
    # x_ref:     (tm, K)    input dtype  flattened child features (8/parent)
    # w_ref:     (K, C)     bf16         conv weight
    # y_ref:     (tm, C)    bf16         conv output staging tile (pre-BN)
    # stats_ref: (1, 2, C)  f32          per-split [sum; sum_sq], written once
    # acc_ref:   (8, C)     f32 scratch  rows 0/1 = running sum / sum_sq
    t = pl.program_id(1)
    n_t = pl.num_programs(1)

    @pl.when(t == 0)
    def _():
        acc_ref[...] = jnp.zeros_like(acc_ref)

    y = jnp.dot(x_ref[...].astype(jnp.bfloat16), w_ref[...],
                preferred_element_type=jnp.float32)
    y_ref[...] = y.astype(y_ref.dtype)

    # Mask rows beyond the true M extent (tail tile and phantom split tiles).
    tile_idx = pl.program_id(0) * n_t + t
    row = tile_idx * tm + jax.lax.broadcasted_iota(jnp.int32, (tm, 1), 0)
    valid = row < m
    acc_ref[0:1, :] += jnp.sum(jnp.where(valid, y, 0.0), axis=0, keepdims=True)
    acc_ref[1:2, :] += jnp.sum(jnp.where(valid, y * y, 0.0), axis=0, keepdims=True)

    @pl.when(t == n_t - 1)
    def _():
        stats_ref[0, :, :] = acc_ref[0:2, :]


def _normalize_kernel(y_ref, ss_ref, o_ref):
    # y_ref: (tm, C) bf16 ; ss_ref: (2, C) f32 = [scale; shift] ; o_ref: (tm, C)
    o_ref[...] = (y_ref[...].astype(jnp.float32) * ss_ref[0:1, :]
                  + ss_ref[1:2, :]).astype(o_ref.dtype)


def downsample_forward(data, weight, bias, gamma, beta, *, tm=512):
    """OctreeConv(k=[2], stride=2, nempty=True, use_bias=True) -> BatchNorm1d.

    data:   (N_child, C_in) with the children of parent p at rows 8p..8p+7
    weight: (8*C_in, C_out) ; bias/gamma/beta: (C_out,)
    Returns (N_child // 8, C_out) float32.
    """
    n_child, c_in = data.shape
    assert n_child % 8 == 0, "complete-octree assumption: N_child must be /8"
    m = n_child // 8
    k = 8 * c_in
    c_out = weight.shape[1]
    # Conv bias cancels exactly under training-mode BatchNorm (mean subtraction),
    # so it is intentionally not used in the kernels.
    del bias

    # ---- tiling ---------------------------------------------------------------
    tm = _round_up(max(int(tm), 8), 8)
    if tm >= m:
        tm = m                      # single full-extent tile (block dim == array dim)
    n_tiles = _cdiv(m, tm)
    n_split = 2 if n_tiles >= 2 else 1      # lets v7x's 2 TCs split phase 1
    t_inner = _cdiv(n_tiles, n_split)
    vmem_limit = _vmem_limit_bytes()

    # No padding, no extra copies: reshape is free (contiguous), bf16 cast of x
    # happens on the VPU inside the kernel (reads 4B/elem once instead of an
    # extra host-side cast pass of 6B/elem).
    x = data.reshape(m, k)
    w = weight.astype(jnp.bfloat16)

    def tile_idx(p, t):
        # Clamp phantom tiles of the split axis onto the split's last real tile
        # (their stats contribution is masked to zero inside the kernel).
        return (jnp.minimum(p * t_inner + t, n_tiles - 1), 0)

    # ---- phase 1: tiled matmul + streaming batch statistics -------------------
    y, stats = pl.pallas_call(
        functools.partial(_conv_stats_kernel, m=m, tm=tm),
        grid=(n_split, t_inner),
        in_specs=[
            pl.BlockSpec((tm, k), tile_idx),
            pl.BlockSpec((k, c_out), lambda p, t: (0, 0)),
        ],
        out_specs=[
            pl.BlockSpec((tm, c_out), tile_idx),
            pl.BlockSpec((1, 2, c_out), lambda p, t: (p, 0, 0)),
        ],
        out_shape=[
            jax.ShapeDtypeStruct((m, c_out), jnp.bfloat16),        # staging y
            jax.ShapeDtypeStruct((n_split, 2, c_out), jnp.float32),
        ],
        scratch_shapes=[pltpu.VMEM((8, c_out), jnp.float32)],
        compiler_params=pltpu.CompilerParams(
            dimension_semantics=("parallel", "arbitrary"),
            vmem_limit_bytes=vmem_limit),
    )(x, w)

    # ---- fold BatchNorm into per-channel scale/shift (tiny (C,) glue) ---------
    s = jnp.sum(stats, axis=0)                          # combine the split halves
    mean = s[0] / m
    var = jnp.maximum(s[1] / m - mean * mean, 0.0)      # biased var, clamped >= 0
    scale = gamma.astype(jnp.float32) * jax.lax.rsqrt(var + EPS)
    shift = beta.astype(jnp.float32) - mean * scale
    ss = jnp.stack([scale, shift], axis=0)              # (2, C) input to phase 2

    # ---- phase 2: mul+add normalization, fully parallel over M tiles ----------
    out = pl.pallas_call(
        _normalize_kernel,
        grid=(n_tiles,),
        in_specs=[
            pl.BlockSpec((tm, c_out), lambda i: (i, 0)),
            pl.BlockSpec((2, c_out), lambda i: (0, 0)),
        ],
        out_specs=pl.BlockSpec((tm, c_out), lambda i: (i, 0)),
        out_shape=jax.ShapeDtypeStruct((m, c_out), jnp.float32),
        compiler_params=pltpu.CompilerParams(
            dimension_semantics=("parallel",),
            vmem_limit_bytes=vmem_limit),
    )(y, ss)

    return out


def downsample_reference(data, weight, bias, gamma, beta):
    """Pure-JAX reference mirroring the PyTorch module (conv bias included,
    two-pass batch stats). Uses the same bf16 operand cast as the kernel's MXU
    path; the kernel additionally stages y in bf16, hence the test tolerance."""
    m = data.shape[0] // 8
    x = data.reshape(m, 8 * data.shape[1]).astype(jnp.bfloat16)
    w = weight.astype(jnp.bfloat16)
    y = jnp.dot(x, w, preferred_element_type=jnp.float32) + bias[None, :]
    mean = jnp.mean(y, axis=0, keepdims=True)
    var = jnp.mean((y - mean) ** 2, axis=0, keepdims=True)
    return gamma[None, :] * (y - mean) * jax.lax.rsqrt(var + EPS) + beta[None, :]


if __name__ == "__main__":
    in_channels = 4
    out_channels = 8
    m_parents = 20                 # not a multiple of the tile -> exercises masking
    n_child = 8 * m_parents        # non-empty octree nodes (complete-octree model)
    k = 8 * in_channels            # kernel_size=[2] -> 2x2x2 = 8 taps

    key = jax.random.PRNGKey(0)
    k_data, k_w, k_b = jax.random.split(key, 3)

    data = jax.random.normal(k_data, (n_child, in_channels), dtype=jnp.float32)
    weight = jax.random.normal(k_w, (k, out_channels), dtype=jnp.float32) / jnp.sqrt(k)
    bias = jax.random.normal(k_b, (out_channels,), dtype=jnp.float32) * 0.1
    gamma = jnp.ones((out_channels,), dtype=jnp.float32)   # BatchNorm weight
    beta = jnp.zeros((out_channels,), dtype=jnp.float32)   # BatchNorm bias

    # small tile so the 2-way split / multi-step grid / tail-mask path is exercised
    out = downsample_forward(data, weight, bias, gamma, beta, tm=8)
    out = jax.block_until_ready(out)

    ref = downsample_reference(data, weight, bias, gamma, beta)
    assert out.shape == (m_parents, out_channels)
    err = float(jnp.max(jnp.abs(out - ref)))
    assert jnp.allclose(out, ref, atol=2e-2, rtol=2e-2), f"mismatch vs reference: {err}"

    print("KERNEL_OK")
</pallas_src>

<mosaic_0001>
module attributes {stable_mosaic.version = 11 : i64} {
  func.func @_conv_stats_kernel(%arg0: i32, %arg1: i32, %arg2: memref<8x32xf32, #tpu.memory_space<vmem>>, %arg3: memref<32x8xbf16, #tpu.memory_space<vmem>>, %arg4: memref<8x8xbf16, #tpu.memory_space<vmem>>, %arg5: memref<1x2x8xf32, #tpu.memory_space<vmem>>, %arg6: memref<8x8xf32, #tpu.memory_space<vmem>>) attributes {dimension_semantics = [#tpu.dimension_semantics<parallel>, #tpu.dimension_semantics<arbitrary>], iteration_bounds = array<i64: 2, 2>, scalar_prefetch = 0 : i64, scratch_operands = 1 : i64, tpu.core_type = #tpu.core_type<tc>, window_params = [{transform_indices = @transform_0, window_bounds = array<i64: 8, 32>}, {pipeline_mode = #tpu.pipeline_mode<synchronous>, transform_indices = @transform_1, window_bounds = array<i64: 32, 8>}, {transform_indices = @transform_2, window_bounds = array<i64: 8, 8>}, {transform_indices = @transform_3, window_bounds = array<i64: 1, 2, 8>}]} {
    %c0_i32 = arith.constant 0 : i32
    %0 = arith.cmpi eq, %arg1, %c0_i32 : i32
    %1 = arith.extui %0 : i1 to i32
    %c0_i32_0 = arith.constant 0 : i32
    %2 = arith.cmpi ne, %1, %c0_i32_0 : i32
    scf.if %2 {
      %cst_18 = arith.constant 0.000000e+00 : f32
      %39 = vector.broadcast %cst_18 : f32 to vector<8x8xf32>
      %c0_19 = arith.constant 0 : index
      %c0_20 = arith.constant 0 : index
      %40 = vector.load %arg6[%c0_19, %c0_20] : memref<8x8xf32, #tpu.memory_space<vmem>>, vector<8x8xf32>
      tpu.vector_store %arg6[%c0_19, %c0_20], %39 {strides = array<i32>} : memref<8x8xf32, #tpu.memory_space<vmem>>, vector<8x8xf32>,
    } else {
    }
    %c0 = arith.constant 0 : index
    %c0_1 = arith.constant 0 : index
    %3 = vector.load %arg2[%c0, %c0_1] : memref<8x32xf32, #tpu.memory_space<vmem>>, vector<8x32xf32>
    %4 = arith.truncf %3 : vector<8x32xf32> to vector<8x32xbf16>
    %c0_2 = arith.constant 0 : index
    %c0_3 = arith.constant 0 : index
    %5 = vector.load %arg3[%c0_2, %c0_3] : memref<32x8xbf16, #tpu.memory_space<vmem>>, vector<32x8xbf16>
    %cst = arith.constant dense<0.000000e+00> : vector<8x8xf32>
    %6 = tpu.matmul %4, %5, %cst {dimension_numbers = #tpu.dot_dimension_numbers<[1], [0], [0], [1], [0, 0, 1, 1], [], []>} : vector<8x32xbf16>, vector<32x8xbf16>, vector<8x8xf32> -> vector<8x8xf32>
    %7 = arith.truncf %6 : vector<8x8xf32> to vector<8x8xbf16>
    %c0_4 = arith.constant 0 : index
    %c0_5 = arith.constant 0 : index
    %8 = vector.load %arg4[%c0_4, %c0_5] : memref<8x8xbf16, #tpu.memory_space<vmem>>, vector<8x8xbf16>
    tpu.vector_store %arg4[%c0_4, %c0_5], %7 {strides = array<i32>} : memref<8x8xbf16, #tpu.memory_space<vmem>>, vector<8x8xbf16>,
    %c2_i32 = arith.constant 2 : i32
    %9 = arith.muli %arg0, %c2_i32 : i32
    %10 = arith.addi %9, %arg1 : i32
    %c8_i32 = arith.constant 8 : i32
    %11 = arith.muli %10, %c8_i32 : i32
    %12 = tpu.iota {dimensions = array<i32: 0>} : vector<8x1xi32>
    %13 = vector.broadcast %11 : i32 to vector<8x1xi32>
    %14 = arith.addi %13, %12 : vector<8x1xi32>
    %c20_i32 = arith.constant 20 : i32
    %15 = vector.broadcast %c20_i32 : i32 to vector<8x1xi32>
    %16 = arith.cmpi slt, %14, %15 : vector<8x1xi32>
    %c0_6 = arith.constant 0 : index
    %c0_7 = arith.constant 0 : index
    %17 = vector.load %arg6[%c0_6, %c0_7] : memref<8x8xf32, #tpu.memory_space<vmem>>, vector<1x8xf32>
    %cst_8 = arith.constant 0.000000e+00 : f32
    %18 = vector.shape_cast %16 : vector<8x1xi1> to vector<8x1xi1>
    %19 = vector.broadcast %18 : vector<8x1xi1> to vector<8x8xi1>
    %20 = vector.broadcast %cst_8 : f32 to vector<8x8xf32>
    %21 = arith.select %19, %6, %20 : vector<8x8xi1>, vector<8x8xf32>
    %cst_9 = arith.constant dense<0.000000e+00> : vector<8xf32>
    %22 = vector.multi_reduction <add>, %21, %cst_9 [0] : vector<8x8xf32> to vector<8xf32>
    %23 = vector.shape_cast %22 : vector<8xf32> to vector<1x8xf32>
    %24 = arith.addf %17, %23 : vector<1x8xf32>
    %c0_10 = arith.constant 0 : index
    %c0_11 = arith.constant 0 : index
    %25 = vector.load %arg6[%c0_10, %c0_11] : memref<8x8xf32, #tpu.memory_space<vmem>>, vector<1x8xf32>
    tpu.vector_store %arg6[%c0_10, %c0_11], %24 {strides = array<i32>} : memref<8x8xf32, #tpu.memory_space<vmem>>, vector<1x8xf32>,
    %c1 = arith.constant 1 : index
    %c0_12 = arith.constant 0 : index
    %26 = vector.load %arg6[%c1, %c0_12] : memref<8x8xf32, #tpu.memory_space<vmem>>, vector<1x8xf32>
    %27 = arith.mulf %6, %6 : vector<8x8xf32>
    %cst_13 = arith.constant 0.000000e+00 : f32
    %28 = vector.shape_cast %16 : vector<8x1xi1> to vector<8x1xi1>
    %29 = vector.broadcast %28 : vector<8x1xi1> to vector<8x8xi1>
    %30 = vector.broadcast %cst_13 : f32 to vector<8x8xf32>
    %31 = arith.select %29, %27, %30 : vector<8x8xi1>, vector<8x8xf32>
    %cst_14 = arith.constant dense<0.000000e+00> : vector<8xf32>
    %32 = vector.multi_reduction <add>, %31, %cst_14 [0] : vector<8x8xf32> to vector<8xf32>
    %33 = vector.shape_cast %32 : vector<8xf32> to vector<1x8xf32>
    %34 = arith.addf %26, %33 : vector<1x8xf32>
    %c1_15 = arith.constant 1 : index
    %c0_16 = arith.constant 0 : index
    %35 = vector.load %arg6[%c1_15, %c0_16] : memref<8x8xf32, #tpu.memory_space<vmem>>, vector<1x8xf32>
    tpu.vector_store %arg6[%c1_15, %c0_16], %34 {strides = array<i32>} : memref<8x8xf32, #tpu.memory_space<vmem>>, vector<1x8xf32>,
    %c1_i32 = arith.constant 1 : i32
    %36 = arith.cmpi eq, %arg1, %c1_i32 : i32
    %37 = arith.extui %36 : i1 to i32
    %c0_i32_17 = arith.constant 0 : i32
    %38 = arith.cmpi ne, %37, %c0_i32_17 : i32
    scf.if %38 {
      %c0_18 = arith.constant 0 : index
      %c0_19 = arith.constant 0 : index
      %39 = vector.load %arg6[%c0_18, %c0_19] : memref<8x8xf32, #tpu.memory_space<vmem>>, vector<2x8xf32>
      %c0_20 = arith.constant 0 : index
      %c0_21 = arith.constant 0 : index
      %c0_22 = arith.constant 0 : index
      %40 = vector.load %arg5[%c0_20, %c0_21, %c0_22] : memref<1x2x8xf32, #tpu.memory_space<vmem>>, vector<1x2x8xf32>
      %41 = vector.shape_cast %40 : vector<1x2x8xf32> to vector<2x8xf32>
      %42 = vector.shape_cast %39 : vector<2x8xf32> to vector<1x2x8xf32>
      tpu.vector_store %arg5[%c0_20, %c0_21, %c0_22], %42 {strides = array<i32>} : memref<1x2x8xf32, #tpu.memory_space<vmem>>, vector<1x2x8xf32>,
    } else {
    }
    return
  }
  func.func @transform_0(%arg0: i32, %arg1: i32) -> (i32, i32) {
    %c2_i32 = arith.constant 2 : i32
    %0 = arith.muli %arg0, %c2_i32 : i32
    %1 = arith.addi %0, %arg1 : i32
    %c2_i32_0 = arith.constant 2 : i32
    %2 = arith.minsi %1, %c2_i32_0 : i32
    %c0_i32 = arith.constant 0 : i32
    %c0_i32_1 = arith.constant 0 : i32
    return %2, %c0_i32 : i32, i32
  }
  func.func @transform_1(%arg0: i32, %arg1: i32) -> (i32, i32) {
    %c0_i32 = arith.constant 0 : i32
    %c0_i32_0 = arith.constant 0 : i32
    %c0_i32_1 = arith.constant 0 : i32
    return %c0_i32, %c0_i32_0 : i32, i32
  }
  func.func @transform_2(%arg0: i32, %arg1: i32) -> (i32, i32) {
    %c2_i32 = arith.constant 2 : i32
    %0 = arith.muli %arg0, %c2_i32 : i32
    %1 = arith.addi %0, %arg1 : i32
    %c2_i32_0 = arith.constant 2 : i32
    %2 = arith.minsi %1, %c2_i32_0 : i32
    %c0_i32 = arith.constant 0 : i32
    %c0_i32_1 = arith.constant 0 : i32
    return %2, %c0_i32 : i32, i32
  }
  func.func @transform_3(%arg0: i32, %arg1: i32) -> (i32, i32, i32) {
    %c0_i32 = arith.constant 0 : i32
    %c0_i32_0 = arith.constant 0 : i32
    %c0_i32_1 = arith.constant 0 : i32
    return %arg0, %c0_i32, %c0_i32_0 : i32, i32, i32
  }
}

</mosaic_0001>

<bundles_post_ra>
// kernel: tpu_custom_call.1
= control target key start
LH: loop header
LB: loop body
LE: loop exit
PB: predicated region body
PF: predicated region fallthrough
CT: control target
= control target key end

     0   :  { %9 = vsyncpa [#allocation4], 0  ;;  %s1077_s0 = inlined_call_operand.hbm [shape: f32[20,32], index: 0, kind: input, shape index: {}]   ;;  %s1078_s1 = inlined_call_operand.vmem [shape: bf16[32,8], index: 1, kind: input, shape index: {}]   ;;  %s1079_s2 = inlined_call_operand.vmem [shape: bf16[20,8], index: 2, kind: output, shape index: {0}]   ;;  %s1080_s3 = inlined_call_operand.hbm [shape: f32[2,2,8], index: 3, kind: output, shape index: {1}]  }
   0x1   :  { %11 = vsyncpa [#allocation4 + $0x1], 0 }
   0x2   :  { %12 = vsyncpa [#allocation5], 0 }
   0x3   :  { %14 = vsyncpa [#allocation5 + $0x1], 0  ;;  %s824_s12 = smov 0   ;;  %s826_s13 = smov 0  }
   0x4   :  { %s828_s14 = smov 0   ;;  %s830_s15 = smov 0  }
   0x5   :  { %s832_s16 = smov 0   ;;  %s834_s17 = smov 0  }
   0x6   :  { %s836_s18 = smov 0   ;;  %s838_s19 = smov 0  }
   0x7   :  { %s840_s20 = smov 0   ;;  %s842_s21 = smov 0  }
   0x8   :  { %s844_s22 = smov 0  }
   0x9 LB: > { %s497_s23 = sadd.s32 4294967295, %s797_s22   ;;  %s498_s24 = sadd.s32 4294967294, %s797_s22   ;;  %s797_s22 = sphi %s844_s22, %s20_s22   ;;  %s793_s21 = sphi %s842_s21, %s1103_s21   ;;  %s789_s20 = sphi %s840_s20, %s1102_s20   ;;  %s785_s19 = sphi %s838_s19, %s1101_s19   ;;  %s781_s18 = sphi %s836_s18, %s1100_s18   ;;  %s777_s17 = sphi %s834_s17, %s1099_s17   ;;  %s773_s16 = sphi %s832_s16, %s1098_s16   ;;  %s769_s15 = sphi %s830_s15, %s1097_s15   ;;  %s765_s14 = sphi %s828_s14, %s1096_s14   ;;  %s761_s13 = sphi %s826_s13, %s1095_s13   ;;  %s757_s12 = sphi %s824_s12, %s1094_s12  }
   0xa   : > { %s29_s25 = sadd.s32 1, %s789_s20  ;;  %s32_s26 = sadd.s32 1, %s793_s21 }
   0xb   : > { %p30_p0 = scmp.ge.s32.totalorder %s29_s25, 2  ;;  %s499_s27 = sshll.u32 %s793_s21, 1 }
   0xc   : > { %s37_s28 = sadd.s32 %s789_s20, %s499_s27  ;;  %s47_s29 = sadd.s32 1, %s777_s17 }
   0xd   : > { %s1105_s25 = smov (%p30_p0, %s29_s25), 0  ;;  %s1107_s26 = smov (!%p30_p0, %s32_s26), %s793_s21 }
   0xe   : > { %p38_p1 = scmp.lt.s32.totalorder %s37_s28, 2  ;;  %p54_p2 = scmp.ne.s32.totalorder %s777_s17, %s773_s16 }
   0xf   : > { %p34_p3 = scmp.ge.s32.totalorder %s1107_s26, 2  ;;  %p55_p4 = scmp.eq.s32.totalorder %s797_s22, 0 }
  0x10   : > { %s1109_s28 = smov (!%p38_p1, %s37_s28), 2  ;;  %p60_p6 = scmp.ne.s32.totalorder %s773_s16, %s769_s15 }
  0x11   : > { %s1111_s26 = smov (%p34_p3, %s1107_s26), 0  ;;  %p894_p5 = por %p55_p4, %p54_p2 }
  0x12   : > { %1083 = sst [smem:[#allocation9_spill]] %s1111_s26  ;;  %s500_s4 = sshll.u32 %s1111_s26, 1 }
  0x13   : > { %p61_p7 = scmp.eq.s32.totalorder %s497_s23, 0  ;;  %s41_s5 = sadd.s32 %s500_s4, %s1105_s25 }
  0x14   : > { %s125_s6 = ssub.s32 %s793_s21, %s1111_s26  ;;  %p42_p8 = scmp.lt.s32.totalorder %s41_s5, 2 }
  0x15   : > { %p906_p9 = por %p61_p7, %p60_p6  ;;  %p126_p10 = scmp.eq.s32.totalorder %s125_s6, 0 }
  0x16   : > { %s128_s8 = sadd.s32 1, %s765_s14  ;;  %s1113_s5 = smov (!%p42_p8, %s41_s5), 2 }
  0x17   : > { %s912_s9 = scalar_select %p126_p10, %s765_s14, %s128_s8  }
  0x18   : > { %s44_s10 = ssub.s32 %s1109_s28, %s1113_s5  ;;  %p138_p11 = scmp.ne.s32.totalorder %s765_s14, %s761_s13 }
  0x19   : > { %p45_p12 = scmp.eq.s32.totalorder %s44_s10, 0  ;;  %p139_p13 = scmp.eq.s32.totalorder %s497_s23, 3 }
  0x1a   : > { %p144_p0 = scmp.ne.s32.totalorder %s761_s13, %s757_s12  ;;  %p145_p1 = scmp.eq.s32.totalorder %s498_s24, 3 }
  0x1b   : > { %s923_s11 = scalar_select %p45_p12, %s777_s17, %s47_s29  }
  0x1c   : > { %p925_p2 = por %p139_p13, %p138_p11  ;;  %p929_p3 = por %p145_p1, %p144_p0 }
  0x1d   : > { %p550_p4 = scmp.lt.s32.totalorder %s797_s22, 4  ;;  %s168_s4 = sand.u32 1, %s777_s17  }
  0x1e   : > { %s1086_s15 = scalar_select %p925_p2, 1, 0 }
  0x1f   : > { %s1087_s27 = scalar_select %p929_p3, 1, 0 }
  0x20   : > { %s507_s5 = sshll.u32 %s1109_s28, 7  ;;  %s505_s6 = sshll.u32 %s168_s4, 3 }
  0x21   : > { %s938_s10 = scalar_lea.hbm %s1077_s0, %s507_s5  ;;  %s172_s24 = scalar_lea.vmem [#allocation3], %s505_s6 }
  0x22   : > { %s183_s29 = sshll.u32 %s172_s24, 4  ;;  %p942_p6 = pnand %p550_p4, %p894_p5  ;;  %s946_s29 = int_to_ptr.vmem [resolvable:$true] %s183_s29 }
  0x23   : > { %s169_s28 = scalar_lea.sflag [#allocation4], %s168_s4  ;;  %s645_s5 = scalar_lea.hbm %s938_s10, 128 }
  0x24   : > { %p646_p10 = scmp.ne.s32.totalorder %s938_s10, %s645_s5  ;;  %p647_p11 = pneg %p942_p6 }
  0x25   : > { %s650_s8 = scalar_lea.hbm %s1077_s0, 384  ;;  %p651_p5 = scmp.lt.u32.totalorder %s938_s10, %s1077_s0 }
  0x26   : > { %p648_p12 = pnand %p647_p11, %p646_p10  ;;  %p652_p0 = scmp.lt.u32.totalorder %s650_s8, %s645_s5 }
  0x27   : > { %p654_p4 = scmp.lt.u32.totalorder %s645_s5, %s938_s10 }
  0x28   : > { %p649_p13 = pneg %p648_p12  ;;  %p653_p1 = por %p652_p0, %p651_p5 }
  0x2a   : > { %p655_p7 = por %p654_p4, %p653_p1 }
  0x2c   : > { %p656_p8 = pnand %p655_p7, %p649_p13 }
  0x2e   : > { %659 = shalt.err (!%p656_p8)
}
  0x2f   : > { %s660_s4 = scalar_lea.vmem %s946_s29, 128  ;;  %s799_s30 = smov [#allocation3]  }
  0x30   : > { %p661_p10 = scmp.ne.s32.totalorder %s946_s29, %s660_s4  ;;  %s665_s6 = sshll.u32 %s799_s30, 4  ;;  %s666_s6 = int_to_ptr.vmem [resolvable:$false] %s665_s6 }
  0x31   : > { %s667_s23 = scalar_lea.vmem %s666_s6, 256  ;;  %p668_p2 = scmp.lt.s32.totalorder %s946_s29, %s666_s6 }
  0x32   : > { %p663_p12 = pnand %p661_p10, %p647_p11  ;;  %p669_p5 = scmp.lt.s32.totalorder %s667_s23, %s660_s4 }
  0x34   : > { %p664_p3 = pneg %p663_p12  ;;  %p670_p0 = por %p669_p5, %p668_p2 }
  0x36   : > { %p671_p1 = pnand %p670_p0, %p664_p3 }
  0x38   : > { %674 = shalt.err (!%p671_p1)
}
  0x39   : > { %545 = dma.hbm_to_vmem [thread:$0]  (!%p942_p6), %s938_s10, 128, %s946_s29, %s169_s28  }
  0x3a   : > { %p1089_p7 = scmp.lt.s32.totalorder %s797_s22, 5  ;;  %p1090_p8 = scmp.ge.s32.totalorder %s797_s22, 1 }
  0x3c   : > { %p189_p11 = pnand %p1090_p8, %p1089_p7 }
  0x3d   : > { %s194_s5 = sand.u32 (!%p189_p11), 1, %s773_s16  }
  0x3e   : > { %192 = sbr.rel (%p189_p11) target bundleno = 355 (0x163), region = 28  ;;  %s509_s8 = sshll.u32 (!%p189_p11), %s194_s5, 3 }
  0x3f   : > { %s195_s24 = scalar_lea.sflag (!%p189_p11), [#allocation4], %s194_s5  ;;  %s198_s4 = scalar_lea.vmem (!%p189_p11), [#allocation3], %s509_s8 }
  0x45   : > { %748 = dma.done.wait (%p906_p9), %s195_s24, 128  }
  0x46   : > { %750 = vsyncadd (%p906_p9), %s195_s24, 4294967168  ;;  %s226_s26 = sand.u32 1, %s761_s13   ;;  %s511_s10 = sshll.u32 %s785_s19, 1 }
  0x47   : > { %s988_s29 = sshll.u32 %s226_s26, 1  ;;  %s991_s28 = sadd.s32 %s781_s18, %s511_s10 }
  0x48   : > { %p235_p2 = scmp.lt.s32.totalorder %s991_s28, 2  ;;  %s228_s8 = scalar_lea.vmem [#allocation6], %s988_s29 }
  0x49   : > { %p516_p9 = scmp.ne.s32.totalorder %s781_s18, 0 }
  0x4a   : > { %s236_s30 = scalar_select %p235_p2, %s991_s28, 2 }
  0x4b   : > { %249 = sbr.rel (%p516_p9) target bundleno = 82 (0x52), region = 36  ;;  %vm250_vm0 = vcmask (!%p516_p9), 64512   ;;  %v800_v0 = vmov (!%p516_p9), 0.0  }
  0x4c   : > { %s1115_s30 = smov (!%p235_p2, %s236_s30), 2  ;;  %251 = vst.msk [vmem:[#allocation2] sm:$0xff] (!%p516_p9), %vm250_vm0, %v800_v0 }
  0x4d   : > { %s515_s6 = sshll.u32 %s1115_s30, 2 }
  0x4e   : > { %s998_s5 = scalar_lea.vmem %s1079_s2, %s515_s6 }
  0x52 PF: > { %v643_v1 = vld [vmem:[%s1078_s1] sm:$0xff]   ;;  %v801_v2 = vmov 0.0   ;;  %v644_v3 = vld [vmem:[%s1078_s1 + $0x8] sm:$0xff]   ;;  %vm802_vm1 = vmmov 0   ;;  %vm270_vm2 = vcmask 261120   ;;  %v320_v6 = vlaneseq  ;;  %s521_s6 = sshll.u32 %s991_s28, 3 }
  0x53   : > { %530 = vmatprep.subr.bf16.mxu0 %v801_v2  ;;  %534 = vmatprep.mubr.msk.bf16.mxu0 %vm802_vm1, %v801_v2  ;;  %v252_v4 = vld [vmem:[%s198_s4] sm:$0xff]  ;;  %v322_v8 = vstv %s521_s6  ;;  %vm329_vm4 = vcmask 64512   ;;  %vm315_vm5 = vcmask 60416   ;;  %v325_v29 = vld [vmem:[#allocation2] sm:$0x1]  ;;  %vm338_vm6 = vcmask 57344  }
  0x54   : > { %531 = vmatpush3.bf16.msra.mxu0 %v643_v1  ;;  %v253_v5 = vpack.c.bf16 %v252_v4, %v252_v4  ;;  %v321_v7 = vshrl.u32 %v320_v6, 7  ;;  %v340_v32 = vld [vmem:[#allocation2 + $0x1] sm:$0x1]  ;;  %p522_p3 = scmp.ne.s32.totalorder %s781_s18, 1 }
  0x55   : > { %532 = vmatprep.subr.bf16.mxu0 %v801_v2  ;;  %vm357_vm7 = vcmask (!%p522_p3), 58368  }
  0x56   : > { %v323_v9 = vadd.s32 %v322_v8, %v321_v7 }
  0x58   : > { %533 = vmatpush3.bf16.msra.mxu0 %v644_v3  ;;  %vm324_vm3 = vcmp.lt.s32.totalorder %v323_v9, 20 }
  0x5b   : > { %535 = vmatmul.mubr.msk.bf16.vlgmr.msra.gmra.mrb[0].mxu0 %vm270_vm2, %v253_v5 }
 0x12e   : > { %v308_v10 = vpop.f32.mrb[0].mxu0 }
 0x12f   : > { %v314_v11 = vpack.c.bf16 %v308_v10, %v308_v10  ;;  %v328_v12 = vsel %vm324_vm3, %v308_v10, 0.0  ;;  %v341_v13 = vmul.f32 %v308_v10, %v308_v10  ;;  %v536_v14 = vpop.f32.mrb[1].mxu0 }
 0x130   : > { %v330_v15 = vsel %vm329_vm4, %v328_v12, 0.0  ;;  %v311_v16 = vpop.f32.mrb[2].mxu0 }
 0x131   : > { %316 = vst.msk [vmem:[%s998_s5] sm:$0xf] %vm315_vm5, %v314_v11  ;;  %v331_v17 = vrot.slane %v330_v15, 4  ;;  %v342_v18 = vsel %vm324_vm3, %v341_v13, 0.0  ;;  %v537_v19 = vpop.f32.mrb[3].mxu0 }
 0x132   : > { %v343_v20 = vsel %vm329_vm4, %v342_v18, 0.0 }
 0x133   : > { %v332_v21 = vadd.f32 %v331_v17, %v330_v15  ;;  %v344_v22 = vrot.slane %v343_v20, 4 }
 0x135   : > { %v333_v23 = vrot.slane %v332_v21, 2  ;;  %v345_v24 = vadd.f32 %v344_v22, %v343_v20 }
 0x137   : > { %v334_v25 = vadd.f32 %v333_v23, %v332_v21  ;;  %v346_v26 = vrot.slane %v345_v24, 2 }
 0x139   : > { %v335_v27 = vrot.slane %v334_v25, 1  ;;  %v347_v28 = vadd.f32 %v346_v26, %v345_v24 }
 0x13b   : > { %v336_v30 = vadd.f32 %v335_v27, %v334_v25  ;;  %v348_v31 = vrot.slane %v347_v28, 1  ;;  %355 = sbr.rel (%p522_p3) target bundleno = 330 (0x14a), region = 40 }
 0x13d   : > { %v337_v33 = vadd.f32 %v336_v30, %v325_v29  ;;  %v349_v34 = vadd.f32 %v348_v31, %v347_v28 }
 0x13f   : > { %339 = vst.msk [vmem:[#allocation2] sm:$0x1] %vm338_vm6, %v337_v33  ;;  %v350_v35 = vadd.f32 %v349_v34, %v340_v32 }
 0x141   : > { %351 = vst.msk [vmem:[#allocation2 + $0x1] sm:$0x1] %vm338_vm6, %v350_v35 }
 0x148   : > { %v356_v36 = vld [vmem:[#allocation2] sm:$0x3] }
 0x149   : > { %358 = vst.msk [vmem:[%s228_s8] sm:$0x3] %vm357_vm7, %v356_v36 }
 0x14a PF: > { %s524_s4 = sshll.u32 %s785_s19, 5  ;;  %s388_s24 = sshll.u32 %s228_s8, 4  ;;  %s389_s24 = int_to_ptr.vmem [resolvable:$true] %s388_s24 }
 0x14b   : > { %s1017_s5 = scalar_lea.hbm %s1080_s3, %s524_s4  ;;  %s368_s18 = scalar_lea.sflag [#allocation5], %s226_s26 }
 0x14c   : > { %s675_s10 = scalar_lea.vmem %s389_s24, 32  ;;  %p1091_p13 = scmp.ne.s32.totalorder %s1086_s15, 0 }
 0x14d   : > { %p676_p6 = scmp.ne.s32.totalorder %s389_s24, %s675_s10  ;;  %s803_s30 = smov [#allocation6]  }
 0x14e   : > { %s679_s7 = sshll.u32 %s803_s30, 4  ;;  %s680_s7 = int_to_ptr.vmem [resolvable:$false] %s679_s7 }
 0x14f   : > { %p677_p4 = pnand %p676_p6, %p1091_p13  ;;  %s681_s6 = scalar_lea.vmem %s680_s7, 64 }
 0x150   : > { %p682_p12 = scmp.lt.s32.totalorder %s389_s24, %s680_s7  ;;  %p683_p5 = scmp.lt.s32.totalorder %s681_s6, %s675_s10 }
 0x151   : > { %p678_p10 = pneg %p677_p4 }
 0x152   : > { %p684_p0 = por %p683_p5, %p682_p12 }
 0x154   : > { %p685_p1 = pnand %p684_p0, %p678_p10 }
 0x156   : > { %688 = shalt.err (!%p685_p1)
}
 0x157   : > { %s689_s19 = scalar_lea.hbm %s1017_s5, 32  ;;  %s693_s8 = scalar_lea.hbm %s1080_s3, 64 }
 0x158   : > { %p690_p7 = scmp.ne.s32.totalorder %s1017_s5, %s689_s19  ;;  %p694_p2 = scmp.lt.u32.totalorder %s1017_s5, %s1080_s3 }
 0x159   : > { %p695_p9 = scmp.lt.u32.totalorder %s693_s8, %s689_s19  ;;  %p697_p6 = scmp.lt.u32.totalorder %s689_s19, %s1017_s5 }
 0x15a   : > { %p691_p8 = pnand %p690_p7, %p1091_p13 }
 0x15b   : > { %p696_p3 = por %p695_p9, %p694_p2 }
 0x15c   : > { %p692_p11 = pneg %p691_p8 }
 0x15d   : > { %p698_p4 = por %p697_p6, %p696_p3 }
 0x15f   : > { %p699_p10 = pnand %p698_p4, %p692_p11 }
 0x161   : > { %702 = shalt.err (!%p699_p10)
}
 0x162   : > { %540 = dma.vmem_to_hbm [thread:$0]  (%p1091_p13), %s389_s24, 32, %s1017_s5, %s368_s18  }
 0x163 PF: > { %p551_p12 = scmp.ge.s32.totalorder %s797_s22, 2  ;;  %s411_s23 = sand.u32 1, %s757_s12  }
 0x164   : > { %p1092_p5 = scmp.ne.s32.totalorder %s1087_s27, 0  ;;  %s412_s10 = scalar_lea.sflag [#allocation5], %s411_s23 }
 0x166   : > { %p547_p0 = pnand %p551_p12, %p1092_p5 }
 0x168   : > { %752 = dma.done.wait (!%p547_p0), %s412_s10, 32  }
 0x169   : > { %754 = vsyncadd (!%p547_p0), %s412_s10, 4294967264  ;;  %s20_s22 = sadd.s32 1, %s797_s22   ;;  %s1093_s5 = sld [smem:[#allocation9_spill]] }
 0x16a   : > { %p17_p1 = scmp.ge.s32.totalorder %s20_s22, 6   ;;  %s1094_s12 = smov %s761_s13 }
 0x16b   : > { %s1095_s13 = smov %s765_s14  ;;  %s1096_s14 = smov %s912_s9 }
 0x16c   : > { %s1097_s15 = smov %s773_s16  ;;  %s1098_s16 = smov %s777_s17 }
 0x16d   : > { %s1099_s17 = smov %s923_s11  ;;  %s1100_s18 = smov %s789_s20 }
 0x16e   : > { %s1101_s19 = smov %s793_s21  ;;  %s1102_s20 = smov %s1105_s25 }
 0x16f   : > { %s1103_s21 = smov %s1093_s5  ;;  %19 = sbr.rel (!%p17_p1) target bundleno = 9 (0x9), region = 93 }
 0x176   :  { %417 = vsyncpa [#allocation4], 1 }
 0x177   :  { %419 = vsyncpa [#allocation4 + $0x1], 1 }
 0x178   :  { %420 = vsyncpa [#allocation5], 1 }
 0x179   :  { %422 = vsyncpa [#allocation5 + $0x1], 1 }

</bundles_post_ra>
